<compile_context>
chip_gen: v7x
topology: tpu7x:2x2x1
jax: 0.10.0
libtpu: 0.0.40
codegen_flags: <defaults>
</compile_context>

<pallas_src>
import jax
import jax.numpy as jnp
from jax.experimental import pallas as pl
from jax.experimental.pallas import tpu as pltpu

LANE = 128


def _round_up(n, m):
    return ((n + m - 1) // m) * m


# ----------------------------------------------------------------------------- kernel
def dqn_kernel(x_ref, w1_ref, b1_ref, w2_ref, b2_ref, w3_ref, b3_ref, o_ref):
    # fc1 + relu
    h = jnp.dot(x_ref[...], w1_ref[...], preferred_element_type=jnp.float32)
    h = jnp.maximum(h + b1_ref[...], 0.0)
    # fc2 + relu
    h = jnp.dot(h, w2_ref[...], preferred_element_type=jnp.float32)
    h = jnp.maximum(h + b2_ref[...], 0.0)
    # fc3 + relu   (the reference module applies ReLU to the output layer too)
    h = jnp.dot(h, w3_ref[...], preferred_element_type=jnp.float32)
    h = jnp.maximum(h + b3_ref[...], 0.0)
    o_ref[...] = h.astype(o_ref.dtype)        # (tile_b, a_dim) f32 store


# --------------------------------------------------------------------------- wrappers
def init_params(key, s_dim, a_dim):
    """PyTorch-style U(-1/sqrt(fan_in), 1/sqrt(fan_in)) init, real (unpadded) shapes."""
    dims = [(s_dim, 120), (120, 40), (40, a_dim)]
    params = []
    keys = jax.random.split(key, 2 * len(dims))
    for i, (fan_in, fan_out) in enumerate(dims):
        bound = 1.0 / jnp.sqrt(fan_in)
        w = jax.random.uniform(keys[2 * i], (fan_in, fan_out),
                               minval=-bound, maxval=bound, dtype=jnp.float32)
        b = jax.random.uniform(keys[2 * i + 1], (1, fan_out),
                               minval=-bound, maxval=bound, dtype=jnp.float32)
        params.extend([w, b])
    return tuple(params)


def prepare_padded_params(params):
    """Zero-pad only the hidden dims (120 -> 128, 40 -> 128).

    Input dim (s_dim) and output dim (a_dim) stay unpadded: their blocks cover the
    full array dim, which is legal, and it minimizes HBM traffic. Padded hidden
    lanes stay exactly zero through bias=0 + ReLU, so results are unaffected.
    """
    w1, b1, w2, b2, w3, b3 = params

    def pad2(a, rows, cols):
        return jnp.pad(a, ((0, rows - a.shape[0]), (0, cols - a.shape[1])))

    h1_pad = _round_up(w1.shape[1], LANE)     # 120 -> 128
    h2_pad = _round_up(w2.shape[1], LANE)     # 40  -> 128
    a_dim = w3.shape[1]

    w1p = pad2(w1, w1.shape[0], h1_pad)       # (s_dim, 128)  f32
    b1p = pad2(b1, 1, h1_pad)                 # (1, 128)
    w2p = pad2(w2, h1_pad, h2_pad)            # (128, 128)
    b2p = pad2(b2, 1, h2_pad)                 # (1, 128)
    w3p = pad2(w3, h2_pad, a_dim)             # (128, a_dim)
    b3p = b3                                  # (1, a_dim)
    return (w1p, b1p, w2p, b2p, w3p, b3p)


def _choose_tile_b(B):
    """Batch tile: large enough to amortize per-step overhead (~0.35 us), and >= 2
    tiles whenever possible so the parallel grid axis can use both TCs on v7x."""
    TILE_CAP = 1024
    if B <= 16:
        return B                              # single full-batch block (== array dim)
    return min(TILE_CAP, _round_up(pl.cdiv(B, 2), 16))


@jax.jit
def dqn_forward(x, padded_params):
    w1, b1, w2, b2, w3, b3 = padded_params
    B, s_dim = x.shape
    a_dim = w3.shape[1]

    tile_b = _choose_tile_b(B)
    n_tiles = pl.cdiv(B, tile_b)              # ragged last block allowed (rows independent)

    resident = lambda i: (0, 0)               # constant block index -> stays in VMEM

    return pl.pallas_call(
        dqn_kernel,
        out_shape=jax.ShapeDtypeStruct((B, a_dim), jnp.float32),
        grid_spec=pltpu.PrefetchScalarGridSpec(
            num_scalar_prefetch=0,
            grid=(n_tiles,),
            in_specs=[
                pl.BlockSpec((tile_b, s_dim), lambda i: (i, 0)),   # x: tiled over batch
                pl.BlockSpec(w1.shape, resident), pl.BlockSpec(b1.shape, resident),
                pl.BlockSpec(w2.shape, resident), pl.BlockSpec(b2.shape, resident),
                pl.BlockSpec(w3.shape, resident), pl.BlockSpec(b3.shape, resident),
            ],
            out_specs=pl.BlockSpec((tile_b, a_dim), lambda i: (i, 0)),
        ),
        compiler_params=pltpu.CompilerParams(
            dimension_semantics=("parallel",),   # batch tiles shard across TCs on v7x
        ),
    )(x, w1, b1, w2, b2, w3, b3)


def reference_forward(x, params):
    w1, b1, w2, b2, w3, b3 = params
    h = jnp.maximum(x @ w1 + b1, 0.0)
    h = jnp.maximum(h @ w2 + b2, 0.0)
    h = jnp.maximum(h @ w3 + b3, 0.0)
    return h


# -------------------------------------------------------------------------------- main
if __name__ == "__main__":
    key = jax.random.PRNGKey(0)
    k_x, k_p = jax.random.split(key)

    B, S_DIM, A_DIM = 8, 16, 8
    x = jax.random.normal(k_x, (B, S_DIM), dtype=jnp.float32)
    params = init_params(k_p, S_DIM, A_DIM)
    padded_params = prepare_padded_params(params)

    out = dqn_forward(x, padded_params)
    out = jax.block_until_ready(out)

    ref = reference_forward(x, params)        # pure f32 reference (module semantics)
    assert out.shape == (B, A_DIM)
    assert jnp.allclose(out, ref, atol=5e-2, rtol=5e-2), "mismatch vs reference"

    print("KERNEL_OK")
</pallas_src>

<mosaic_0001>
module attributes {stable_mosaic.version = 11 : i64} {
  func.func @dqn_kernel(%arg0: i32, %arg1: memref<8x16xf32, #tpu.memory_space<vmem>>, %arg2: memref<16x128xf32, #tpu.memory_space<vmem>>, %arg3: memref<1x128xf32, #tpu.memory_space<vmem>>, %arg4: memref<128x128xf32, #tpu.memory_space<vmem>>, %arg5: memref<1x128xf32, #tpu.memory_space<vmem>>, %arg6: memref<128x8xf32, #tpu.memory_space<vmem>>, %arg7: memref<1x8xf32, #tpu.memory_space<vmem>>, %arg8: memref<8x8xf32, #tpu.memory_space<vmem>>) attributes {dimension_semantics = [#tpu.dimension_semantics<parallel>], iteration_bounds = array<i64: 1>, scalar_prefetch = 0 : i64, scratch_operands = 0 : i64, tpu.core_type = #tpu.core_type<tc>, window_params = [{transform_indices = @transform_0, window_bounds = array<i64: 8, 16>}, {pipeline_mode = #tpu.pipeline_mode<synchronous>, transform_indices = @transform_1, window_bounds = array<i64: 16, 128>}, {pipeline_mode = #tpu.pipeline_mode<synchronous>, transform_indices = @transform_2, window_bounds = array<i64: 1, 128>}, {pipeline_mode = #tpu.pipeline_mode<synchronous>, transform_indices = @transform_3, window_bounds = array<i64: 128, 128>}, {pipeline_mode = #tpu.pipeline_mode<synchronous>, transform_indices = @transform_4, window_bounds = array<i64: 1, 128>}, {pipeline_mode = #tpu.pipeline_mode<synchronous>, transform_indices = @transform_5, window_bounds = array<i64: 128, 8>}, {pipeline_mode = #tpu.pipeline_mode<synchronous>, transform_indices = @transform_6, window_bounds = array<i64: 1, 8>}, {transform_indices = @transform_7, window_bounds = array<i64: 8, 8>}]} {
    %c0 = arith.constant 0 : index
    %c0_0 = arith.constant 0 : index
    %0 = vector.load %arg1[%c0, %c0_0] : memref<8x16xf32, #tpu.memory_space<vmem>>, vector<8x16xf32>
    %c0_1 = arith.constant 0 : index
    %c0_2 = arith.constant 0 : index
    %1 = vector.load %arg2[%c0_1, %c0_2] : memref<16x128xf32, #tpu.memory_space<vmem>>, vector<16x128xf32>
    %cst = arith.constant dense<0.000000e+00> : vector<8x128xf32>
    %2 = tpu.matmul %0, %1, %cst {dimension_numbers = #tpu.dot_dimension_numbers<[1], [0], [0], [1], [0, 0, 1, 1], [], []>} : vector<8x16xf32>, vector<16x128xf32>, vector<8x128xf32> -> vector<8x128xf32>
    %c0_3 = arith.constant 0 : index
    %c0_4 = arith.constant 0 : index
    %3 = vector.load %arg3[%c0_3, %c0_4] : memref<1x128xf32, #tpu.memory_space<vmem>>, vector<1x128xf32>
    %4 = vector.broadcast %3 : vector<1x128xf32> to vector<8x128xf32>
    %5 = arith.addf %2, %4 : vector<8x128xf32>
    %cst_5 = arith.constant 0.000000e+00 : f32
    %6 = vector.broadcast %cst_5 : f32 to vector<8x128xf32>
    %7 = arith.maximumf %5, %6 : vector<8x128xf32>
    %c0_6 = arith.constant 0 : index
    %c0_7 = arith.constant 0 : index
    %8 = vector.load %arg4[%c0_6, %c0_7] : memref<128x128xf32, #tpu.memory_space<vmem>>, vector<128x128xf32>
    %cst_8 = arith.constant dense<0.000000e+00> : vector<8x128xf32>
    %9 = tpu.matmul %7, %8, %cst_8 {dimension_numbers = #tpu.dot_dimension_numbers<[1], [0], [0], [1], [0, 0, 1, 1], [], []>} : vector<8x128xf32>, vector<128x128xf32>, vector<8x128xf32> -> vector<8x128xf32>
    %c0_9 = arith.constant 0 : index
    %c0_10 = arith.constant 0 : index
    %10 = vector.load %arg5[%c0_9, %c0_10] : memref<1x128xf32, #tpu.memory_space<vmem>>, vector<1x128xf32>
    %11 = vector.broadcast %10 : vector<1x128xf32> to vector<8x128xf32>
    %12 = arith.addf %9, %11 : vector<8x128xf32>
    %cst_11 = arith.constant 0.000000e+00 : f32
    %13 = vector.broadcast %cst_11 : f32 to vector<8x128xf32>
    %14 = arith.maximumf %12, %13 : vector<8x128xf32>
    %c0_12 = arith.constant 0 : index
    %c0_13 = arith.constant 0 : index
    %15 = vector.load %arg6[%c0_12, %c0_13] : memref<128x8xf32, #tpu.memory_space<vmem>>, vector<128x8xf32>
    %cst_14 = arith.constant dense<0.000000e+00> : vector<8x8xf32>
    %16 = tpu.matmul %14, %15, %cst_14 {dimension_numbers = #tpu.dot_dimension_numbers<[1], [0], [0], [1], [0, 0, 1, 1], [], []>} : vector<8x128xf32>, vector<128x8xf32>, vector<8x8xf32> -> vector<8x8xf32>
    %c0_15 = arith.constant 0 : index
    %c0_16 = arith.constant 0 : index
    %17 = vector.load %arg7[%c0_15, %c0_16] : memref<1x8xf32, #tpu.memory_space<vmem>>, vector<1x8xf32>
    %18 = vector.broadcast %17 : vector<1x8xf32> to vector<8x8xf32>
    %19 = arith.addf %16, %18 : vector<8x8xf32>
    %cst_17 = arith.constant 0.000000e+00 : f32
    %20 = vector.broadcast %cst_17 : f32 to vector<8x8xf32>
    %21 = arith.maximumf %19, %20 : vector<8x8xf32>
    %c0_18 = arith.constant 0 : index
    %c0_19 = arith.constant 0 : index
    %22 = vector.load %arg8[%c0_18, %c0_19] : memref<8x8xf32, #tpu.memory_space<vmem>>, vector<8x8xf32>
    tpu.vector_store %arg8[%c0_18, %c0_19], %21 {strides = array<i32>} : memref<8x8xf32, #tpu.memory_space<vmem>>, vector<8x8xf32>,
    return
  }
  func.func @transform_0(%arg0: i32) -> (i32, i32) {
    %c0_i32 = arith.constant 0 : i32
    %c0_i32_0 = arith.constant 0 : i32
    return %arg0, %c0_i32 : i32, i32
  }
  func.func @transform_1(%arg0: i32) -> (i32, i32) {
    %c0_i32 = arith.constant 0 : i32
    %c0_i32_0 = arith.constant 0 : i32
    %c0_i32_1 = arith.constant 0 : i32
    return %c0_i32, %c0_i32_0 : i32, i32
  }
  func.func @transform_2(%arg0: i32) -> (i32, i32) {
    %c0_i32 = arith.constant 0 : i32
    %c0_i32_0 = arith.constant 0 : i32
    %c0_i32_1 = arith.constant 0 : i32
    return %c0_i32, %c0_i32_0 : i32, i32
  }
  func.func @transform_3(%arg0: i32) -> (i32, i32) {
    %c0_i32 = arith.constant 0 : i32
    %c0_i32_0 = arith.constant 0 : i32
    %c0_i32_1 = arith.constant 0 : i32
    return %c0_i32, %c0_i32_0 : i32, i32
  }
  func.func @transform_4(%arg0: i32) -> (i32, i32) {
    %c0_i32 = arith.constant 0 : i32
    %c0_i32_0 = arith.constant 0 : i32
    %c0_i32_1 = arith.constant 0 : i32
    return %c0_i32, %c0_i32_0 : i32, i32
  }
  func.func @transform_5(%arg0: i32) -> (i32, i32) {
    %c0_i32 = arith.constant 0 : i32
    %c0_i32_0 = arith.constant 0 : i32
    %c0_i32_1 = arith.constant 0 : i32
    return %c0_i32, %c0_i32_0 : i32, i32
  }
  func.func @transform_6(%arg0: i32) -> (i32, i32) {
    %c0_i32 = arith.constant 0 : i32
    %c0_i32_0 = arith.constant 0 : i32
    %c0_i32_1 = arith.constant 0 : i32
    return %c0_i32, %c0_i32_0 : i32, i32
  }
  func.func @transform_7(%arg0: i32) -> (i32, i32) {
    %c0_i32 = arith.constant 0 : i32
    %c0_i32_0 = arith.constant 0 : i32
    return %arg0, %c0_i32 : i32, i32
  }
}

</mosaic_0001>

<bundles_post_ra>
// kernel: dqn_forward.1
= control target key start
LH: loop header
LB: loop body
LE: loop exit
PB: predicated region body
PF: predicated region fallthrough
CT: control target
= control target key end

     0   :  { %12 = vsyncpa [#allocation3], 0  ;;  %s751_s0 = inlined_call_operand.hbm [shape: f32[8,16], index: 0, kind: input, shape index: {}]   ;;  %s752_s1 = inlined_call_operand.vmem [shape: f32[16,128], index: 1, kind: input, shape index: {}]   ;;  %s753_s2 = inlined_call_operand.vmem [shape: f32[1,128], index: 2, kind: input, shape index: {}]   ;;  %s754_s3 = inlined_call_operand.vmem [shape: f32[128,128], index: 3, kind: input, shape index: {}]   ;;  %s755_s4 = inlined_call_operand.vmem [shape: f32[1,128], index: 4, kind: input, shape index: {}]   ;;  %s756_s5 = inlined_call_operand.vmem [shape: f32[128,8], index: 5, kind: input, shape index: {}]   ;;  %s757_s6 = inlined_call_operand.vmem [shape: f32[1,8], index: 6, kind: input, shape index: {}]   ;;  %s758_s7 = inlined_call_operand.hbm [shape: f32[8,8], index: 7, kind: output, shape index: {}]  }
   0x1   :  { %13 = vsyncpa [#allocation4], 0  ;;  %s551_s24 = smov [#allocation2]   ;;  %s503_s28 = scalar_lea.hbm %s751_s0, 128 }
   0x2   :  { %s20_s25 = sshll.u32 %s551_s24, 4  ;;  %p504_p0 = scmp.ne.s32.totalorder %s751_s0, %s503_s28  ;;  %s21_s25 = int_to_ptr.vmem [resolvable:$true] %s20_s25 }
   0x3   :  { %p507_p1 = scmp.lt.u32.totalorder %s503_s28, %s751_s0 }
   0x5   :  { %p509_p2 = pnand %p507_p1, %p504_p0 }
   0x7   :  { %512 = shalt.err (!%p509_p2)
}
   0x8   :  { %s513_s10 = scalar_lea.vmem %s21_s25, 128  ;;  %p518_p4 = scmp.lt.s32.totalorder %s21_s25, %s21_s25 }
   0x9   :  { %p514_p3 = scmp.ne.s32.totalorder %s21_s25, %s513_s10  ;;  %p519_p5 = scmp.lt.s32.totalorder %s513_s10, %s513_s10 }
   0xb   :  { %p520_p6 = por %p519_p5, %p518_p4 }
   0xd   :  { %p521_p7 = pnand %p520_p6, %p514_p3 }
   0xf   :  { %524 = shalt.err (!%p521_p7)
}
  0x10   :  { %23 = dma.hbm_to_vmem [thread:$0]  %s751_s0, 128, %s21_s25, [#allocation3]  }
  0x11   :  { %547 = dma.done.wait [#allocation3], 128  }
  0x12   :  { %548 = vsyncadd [#allocation3], 4294967168  ;;  %v552_v0 = vmov 0.0|0.0   ;;  %vm553_vm0 = vmmov 0   ;;  %v554_v1 = vmov 0.0   ;;  %v40_v2 = vld [vmem:[%s752_s1] sm:$0xff] }
  0x13   :  { %447 = vmatprep.subr.bf16.mxu0 %v552_v0  ;;  %374 = vmatprep.mubr.msk.f32.mxu0 %vm553_vm0, %v554_v1  ;;  %v41_v3 = vld [vmem:[%s752_s1 + $0x8] sm:$0xff]  ;;  %v124_v5 = vld [vmem:[%s754_s3] sm:$0xff]  ;;  %v126_v7 = vld [vmem:[%s754_s3 + $0x10] sm:$0xff]  ;;  %vm49_vm1 = vcmask 130048   ;;  %s555_s9 = smov [#allocation5]   ;;  %vm312_vm2 = vcmask 64512  }
  0x14   :  { %450 = vmatprep.subr.bf16.mxu1 %v552_v0  ;;  %409 = vmatprep.mubr.msk.f32.mxu1 %vm553_vm0, %v554_v1  ;;  %v448_v4 = vpack.c.bf16 %v41_v3, %v40_v2  ;;  %v125_v6 = vld [vmem:[%s754_s3 + $0x8] sm:$0xff]  ;;  %v127_v9 = vld [vmem:[%s754_s3 + $0x18] sm:$0xff]  ;;  %v39_v10 = vld [vmem:[#allocation2] sm:$0xff]  ;;  %s320_s10 = sshll.u32 %s555_s9, 4  ;;  %s321_s10 = int_to_ptr.vmem [resolvable:$true] %s320_s10 }
  0x15   :  { %v451_v8 = vpack.c.bf16 %v125_v6, %v124_v5  ;;  %v454_v11 = vpack.c.bf16 %v127_v9, %v126_v7  ;;  %v128_v12 = vld [vmem:[%s754_s3 + $0x20] sm:$0xff]  ;;  %v129_v13 = vld [vmem:[%s754_s3 + $0x28] sm:$0xff]  ;;  %v130_v15 = vld [vmem:[%s754_s3 + $0x30] sm:$0xff]  ;;  %p530_p9 = scmp.lt.s32.totalorder %s321_s10, %s321_s10 }
  0x16   :  { %449 = vmatpush3.bf16.msra.mxu0 %v448_v4  ;;  %v457_v14 = vpack.c.bf16 %v129_v13, %v128_v12  ;;  %v131_v16 = vld [vmem:[%s754_s3 + $0x38] sm:$0xff]  ;;  %v132_v18 = vld [vmem:[%s754_s3 + $0x40] sm:$0xff]  ;;  %v133_v19 = vld [vmem:[%s754_s3 + $0x48] sm:$0xff] }
  0x17   :  { %452 = vmatpush3.bf16.msra.mxu1 %v451_v8  ;;  %474 = vmatprep.subr.bf16.mxu0 %v552_v0  ;;  %v460_v17 = vpack.c.bf16 %v131_v16, %v130_v15  ;;  %v463_v20 = vpack.c.bf16 %v133_v19, %v132_v18  ;;  %v134_v21 = vld [vmem:[%s754_s3 + $0x50] sm:$0xff]  ;;  %v135_v22 = vld [vmem:[%s754_s3 + $0x58] sm:$0xff]  ;;  %v136_v24 = vld [vmem:[%s754_s3 + $0x60] sm:$0xff] }
  0x18   :  { %453 = vmatprep.subr.bf16.mxu1 %v552_v0  ;;  %v466_v23 = vpack.c.bf16 %v135_v22, %v134_v21  ;;  %v137_v25 = vld [vmem:[%s754_s3 + $0x68] sm:$0xff]  ;;  %v138_v27 = vld [vmem:[%s754_s3 + $0x70] sm:$0xff]  ;;  %v139_v28 = vld [vmem:[%s754_s3 + $0x78] sm:$0xff] }
  0x19   :  { %375 = vmatmul.mubr.msk.f32.vlgmr.msra.gmra.mrb[0].mxu0 %vm49_vm1, %v39_v10  ;;  %v469_v26 = vpack.c.bf16 %v137_v25, %v136_v24  ;;  %v472_v29 = vpack.c.bf16 %v139_v28, %v138_v27  ;;  %v218_v30 = vld [vmem:[%s756_s5] sm:$0xff]  ;;  %v219_v31 = vld [vmem:[%s756_s5 + $0x8] sm:$0xff]  ;;  %v220_v32 = vld [vmem:[%s756_s5 + $0x10] sm:$0xff] }
  0x1a   :  { %444 = vmatprep.mubr.msk.f32.mxu0 %vm553_vm0, %v554_v1  ;;  %v475_v33 = vpack.c.bf16 %v219_v31, %v218_v30  ;;  %v221_v34 = vld [vmem:[%s756_s5 + $0x18] sm:$0xff]  ;;  %v222_v36 = vld [vmem:[%s756_s5 + $0x20] sm:$0xff]  ;;  %v223_v37 = vld [vmem:[%s756_s5 + $0x28] sm:$0xff] }
  0x1b   :  { %455 = vmatpush3.bf16.msra.mxu1 %v454_v11  ;;  %v478_v35 = vpack.c.bf16 %v221_v34, %v220_v32  ;;  %v481_v38 = vpack.c.bf16 %v223_v37, %v222_v36  ;;  %v224_v39 = vld [vmem:[%s756_s5 + $0x30] sm:$0xff]  ;;  %v225_v40 = vld [vmem:[%s756_s5 + $0x38] sm:$0xff]  ;;  %v226_v42 = vld [vmem:[%s756_s5 + $0x40] sm:$0xff] }
  0x1c   :  { %456 = vmatprep.subr.bf16.mxu1 %v552_v0  ;;  %476 = vmatpush3.bf16.msra.mxu0 %v475_v33  ;;  %v484_v41 = vpack.c.bf16 %v225_v40, %v224_v39  ;;  %v227_v43 = vld [vmem:[%s756_s5 + $0x48] sm:$0xff]  ;;  %v228_v45 = vld [vmem:[%s756_s5 + $0x50] sm:$0xff]  ;;  %v229_v46 = vld [vmem:[%s756_s5 + $0x58] sm:$0xff] }
  0x1d   :  { %477 = vmatprep.subr.bf16.mxu0 %v552_v0  ;;  %v487_v44 = vpack.c.bf16 %v227_v43, %v226_v42  ;;  %v490_v47 = vpack.c.bf16 %v229_v46, %v228_v45  ;;  %v230_v48 = vld [vmem:[%s756_s5 + $0x60] sm:$0xff]  ;;  %v231_v49 = vld [vmem:[%s756_s5 + $0x68] sm:$0xff]  ;;  %v232_v56 = vld [vmem:[%s756_s5 + $0x70] sm:$0xff] }
  0x1e   :  { %v493_v50 = vpack.c.bf16 %v231_v49, %v230_v48  ;;  %v329_v51 = vld [vmem:[%s753_s2] ss:$0 sm:$0xff]  ;;  %v233_v57 = vld [vmem:[%s756_s5 + $0x78] sm:$0xff]  ;;  %s525_s5 = scalar_lea.vmem %s321_s10, 128 }
  0x1f   :  { %458 = vmatpush3.bf16.msra.mxu1 %v457_v14  ;;  %v496_v58 = vpack.c.bf16 %v233_v57, %v232_v56  ;;  %v331_v59 = vld [vmem:[%s755_s4] ss:$0 sm:$0xff]  ;;  %p526_p8 = scmp.ne.s32.totalorder %s321_s10, %s525_s5  ;;  %p531_p10 = scmp.lt.s32.totalorder %s525_s5, %s525_s5 }
  0x20   :  { %459 = vmatprep.subr.bf16.mxu1 %v552_v0  ;;  %479 = vmatpush3.bf16.msra.mxu0 %v478_v35 }
  0x21   :  { %480 = vmatprep.subr.bf16.mxu0 %v552_v0  ;;  %p532_p11 = por %p531_p10, %p530_p9 }
  0x23   :  { %461 = vmatpush3.bf16.msra.mxu1 %v460_v17  ;;  %p533_p12 = pnand %p532_p11, %p526_p8 }
  0x24   :  { %462 = vmatprep.subr.bf16.mxu1 %v552_v0  ;;  %482 = vmatpush3.bf16.msra.mxu0 %v481_v38 }
  0x25   :  { %483 = vmatprep.subr.bf16.mxu0 %v552_v0 }
  0x27   :  { %464 = vmatpush3.bf16.msra.mxu1 %v463_v20 }
  0x28   :  { %465 = vmatprep.subr.bf16.mxu1 %v552_v0  ;;  %485 = vmatpush3.bf16.msra.mxu0 %v484_v41 }
  0x29   :  { %486 = vmatprep.subr.bf16.mxu0 %v552_v0 }
  0x2b   :  { %467 = vmatpush3.bf16.msra.mxu1 %v466_v23 }
  0x2c   :  { %468 = vmatprep.subr.bf16.mxu1 %v552_v0  ;;  %488 = vmatpush3.bf16.msra.mxu0 %v487_v44 }
  0x2d   :  { %489 = vmatprep.subr.bf16.mxu0 %v552_v0 }
  0x2f   :  { %470 = vmatpush3.bf16.msra.mxu1 %v469_v26 }
  0x30   :  { %471 = vmatprep.subr.bf16.mxu1 %v552_v0  ;;  %491 = vmatpush3.bf16.msra.mxu0 %v490_v47 }
  0x31   :  { %492 = vmatprep.subr.bf16.mxu0 %v552_v0 }
  0x33   :  { %473 = vmatpush3.bf16.msra.mxu1 %v472_v29 }
  0x34   :  { %494 = vmatpush3.bf16.msra.mxu0 %v493_v50 }
  0x35   :  { %495 = vmatprep.subr.bf16.mxu0 %v552_v0  ;;  %v332_v0 = vld [vmem:[%s757_s6] ss:$0 sm:$0xff] }
  0x38   :  { %497 = vmatpush3.bf16.msra.mxu0 %v496_v58 }
  0xec   :  { %v119_v52 = vpop.f32.mrb[0].mxu0 }
  0xed   :  { %v120_v53 = vadd.f32 %v329_v51, %v119_v52  ;;  %v376_v54 = vpop.f32.mrb[1].mxu0 }
  0xef   :  { %v123_v55 = vmax.f32 %v120_v53, 0.0 }
  0xf1   :  { %410 = vmatmul.mubr.f32.vlgmr.msra.gmra.mrb[0].mxu1 %v123_v55 }
 0x1c4   :  { %v213_v60 = vpop.f32.mrb[0].mxu1 }
 0x1c5   :  { %v214_v61 = vadd.f32 %v331_v59, %v213_v60  ;;  %v411_v62 = vpop.f32.mrb[1].mxu1 }
 0x1c7   :  { %v217_v63 = vmax.f32 %v214_v61, 0.0 }
 0x1c9   :  { %445 = vmatmul.mubr.f32.vlgmr.msra.gmra.mrb[2].mxu0 %v217_v63 }
 0x29c   :  { %v307_v1 = vpop.f32.mrb[2].mxu0 }
 0x29d   :  { %v308_v2 = vadd.f32 %v332_v0, %v307_v1  ;;  %v446_v3 = vpop.f32.mrb[3].mxu0 }
 0x29f   :  { %v311_v4 = vmax.f32 %v308_v2, 0.0 }
 0x2a1   :  { %313 = vst.msk [vmem:[#allocation5] sm:$0xff] %vm312_vm2, %v311_v4 }
 0x2a2   :  { %536 = shalt.err (!%p533_p12)
}
 0x2a3   :  { %s537_s6 = scalar_lea.hbm %s758_s7, 128 }
 0x2a4   :  { %p538_p13 = scmp.ne.s32.totalorder %s758_s7, %s537_s6  ;;  %p541_p0 = scmp.lt.u32.totalorder %s537_s6, %s758_s7 }
 0x2a6   :  { %p543_p1 = pnand %p541_p0, %p538_p13 }
 0x2a8   :  { %546 = shalt.err (!%p543_p1)
}
 0x2a9   :  { %323 = dma.vmem_to_hbm [thread:$0]  %s321_s10, 128, %s758_s7, [#allocation4]  }
 0x2aa   :  { %549 = dma.done.wait [#allocation4], 128  }
 0x2ab   :  { %550 = vsyncadd [#allocation4], 4294967168 }
 0x2ac   :  { %327 = vsyncpa [#allocation3], 1 }
 0x2ad   :  { %328 = vsyncpa [#allocation4], 1 }

</bundles_post_ra>
